<compile_context>
chip_gen: v7x
topology: tpu7x:2x2x1
jax: 0.10.0
libtpu: 0.0.40
codegen_flags: <defaults>
</compile_context>

<pallas_src>
import functools

import jax
import jax.numpy as jnp
from jax import lax
from jax.experimental import pallas as pl
from jax.experimental.pallas import tpu as pltpu


# --------------------------------------------------------------------------
# Pallas kernels
# --------------------------------------------------------------------------

def _convt_stats_kernel(p_ref, w_ref, b_ref, o_ref, s_ref):
    """Fused sub-pixel complex transposed-conv matmul + BN partial stats.

    One bf16 MXU matmul per tile (f32 accumulation), bias add, bf16 store of
    the conv intermediate, plus per-column partial sum / sum-of-squares
    (reduced and corrected for padded rows / phase overhang outside).
    """
    o = jnp.dot(p_ref[...], w_ref[...], preferred_element_type=jnp.float32)
    o = o + b_ref[...]
    o_ref[...] = o.astype(o_ref.dtype)
    s_ref[0:1, :] = jnp.sum(o, axis=0, keepdims=True)
    s_ref[1:2, :] = jnp.sum(o * o, axis=0, keepdims=True)


def _convt_polar_kernel(p_ref, w_ref, b_ref, o_ref):
    """last_layer branch fused into the matmul: (c / (|c|+1e-8)) * tanh(|c|)."""
    o = jnp.dot(p_ref[...], w_ref[...], preferred_element_type=jnp.float32)
    o = o + b_ref[...]
    a = jnp.abs(o)
    o_ref[...] = (o / (a + 1e-8)) * jnp.tanh(a)


def _bn_lrelu_kernel(o_ref, scale_ref, shift_ref, y_ref):
    """Fused BatchNorm-apply + LeakyReLU(0.01); writes in place (aliased)."""
    y = o_ref[...].astype(jnp.float32) * scale_ref[...] + shift_ref[...]
    y_ref[...] = jnp.where(y >= 0.0, y, 0.01 * y).astype(y_ref.dtype)


# --------------------------------------------------------------------------
# Sub-pixel (pixel-shuffle) decomposition of the transposed conv
# --------------------------------------------------------------------------

def _round_up(v, m):
    return ((v + m - 1) // m) * m


def _dim_plan(k, s, p, out_len):
    """1-D sub-pixel plan.  Returns (taps, a_min, ku, q) with
    out[q*s + r] = sum_{(u, kt) in taps[r]} x[q + a_min + u] * w[kt]."""
    per_phase = []
    a_min, a_max = None, None
    for r in range(s):
        e0 = (r + p) % s
        d = (r + p) // s
        j_count = max(0, -(-(k - e0) // s))          # ceil((k - e0) / s)
        offs = [d - j for j in range(j_count)]
        ktaps = [e0 + j * s for j in range(j_count)]
        per_phase.append((offs, ktaps))
        if offs:
            a_min = min(offs) if a_min is None else min(a_min, min(offs))
            a_max = max(offs) if a_max is None else max(a_max, max(offs))
    if a_min is None:
        a_min, a_max = 0, 0
    ku = a_max - a_min + 1
    q = -(-out_len // s)                             # ceil(out_len / s)
    taps = [[(off - a_min, kt) for off, kt in zip(offs, kts)]
            for offs, kts in per_phase]
    return taps, a_min, ku, q


def _window_slice(x, axis, a_min, length, size):
    """View of `length` along `axis` where element i = x[i + a_min] (0 outside)."""
    left = max(0, -a_min)
    right = max(0, a_min + length - size)
    pads = [(0, 0)] * x.ndim
    pads[axis] = (left, right)
    xp = jnp.pad(x, pads)
    start = a_min + left
    return lax.slice_in_dim(xp, start, start + length, axis=axis)


def _im2col(xp, ku_h, ku_w, qh, qw):
    cols = []
    for uh in range(ku_h):
        for uw in range(ku_w):
            cols.append(xp[:, uh:uh + qh, uw:uw + qw, :])
    p = jnp.stack(cols, axis=3)                      # [N, Qh, Qw, Ku, 2*Cin]
    n = xp.shape[0]
    ctot = xp.shape[-1]
    return p.reshape(n * qh * qw, ku_h * ku_w * ctot)


def _subpixel_weight(w_real, w_imag, taps_h, taps_w, ku_h, ku_w, sh, sw):
    """Complex sub-pixel weight matrix [Ku_h*Ku_w*2*Cin, sh*sw*2*Cout].

    Input rows ordered (tap, [real x | imag x], cin); output columns ordered
    (phase ry, phase rx, [real out | imag out], cout)."""
    cin, cout = w_real.shape[0], w_real.shape[1]
    wmat = jnp.zeros((ku_h, ku_w, 2, cin, sh, sw, 2, cout), jnp.float32)
    for ry in range(sh):
        for rx in range(sw):
            for (uh, ky) in taps_h[ry]:
                for (uw, kx) in taps_w[rx]:
                    wr = w_real[:, :, ky, kx]
                    wi = w_imag[:, :, ky, kx]
                    wmat = wmat.at[uh, uw, 0, :, ry, rx, 0, :].set(wr)   # xr -> re
                    wmat = wmat.at[uh, uw, 0, :, ry, rx, 1, :].set(wi)   # xr -> im
                    wmat = wmat.at[uh, uw, 1, :, ry, rx, 0, :].set(-wi)  # xi -> re
                    wmat = wmat.at[uh, uw, 1, :, ry, rx, 1, :].set(wr)   # xi -> im
    return wmat.reshape(ku_h * ku_w * 2 * cin, sh * sw * 2 * cout)


# --------------------------------------------------------------------------
# Decoder forward (Pallas path)
# --------------------------------------------------------------------------

def decoder_forward(x, params, *, filter_size, stride_size, padding,
                    output_padding, last_layer=False, tm=1024):
    # x: [N, Cin, H, W, 2]  (real/imag stacked on last dim, PyTorch NCHW)
    n, cin, h, w, _ = x.shape
    kh, kw = filter_size
    sh, sw = stride_size
    hout = (h - 1) * sh - 2 * padding[0] + kh + output_padding[0]
    wout = (w - 1) * sw - 2 * padding[1] + kw + output_padding[1]
    cout = params["w_real"].shape[1]
    c2 = 2 * cout
    c2p = sh * sw * c2                               # matmul N dim (lane-dense)

    taps_h, amin_h, ku_h, qh = _dim_plan(kh, sh, padding[0], hout)
    taps_w, amin_w, ku_w, qw = _dim_plan(kw, sw, padding[1], wout)

    # NHWC, channels stacked [real 0..Cin-1 | imag 0..Cin-1].
    xr = jnp.transpose(x[..., 0], (0, 2, 3, 1))
    xi = jnp.transpose(x[..., 1], (0, 2, 3, 1))
    xc = jnp.concatenate([xr, xi], axis=-1).astype(jnp.float32)
    xc = _window_slice(xc, 1, amin_h, qh + ku_h - 1, h)
    xc = _window_slice(xc, 2, amin_w, qw + ku_w - 1, w)
    patches = _im2col(xc, ku_h, ku_w, qh, qw)        # [M0, Ku_h*Ku_w*2*Cin]

    m0 = n * qh * qw
    k0 = ku_h * ku_w * 2 * cin
    tm_eff = min(tm, _round_up(m0, 256))             # clamp for small problems
    mp = _round_up(m0, tm_eff)
    kp = _round_up(k0, 128)
    patches = jnp.pad(patches, ((0, mp - m0), (0, kp - k0))).astype(jnp.bfloat16)

    w_c = _subpixel_weight(params["w_real"], params["w_imag"],
                           taps_h, taps_w, ku_h, ku_w, sh, sw)
    w_c = jnp.pad(w_c, ((0, kp - k0), (0, 0))).astype(jnp.bfloat16)

    # Effective complex biases, per channel then replicated per phase column.
    bias_base = jnp.concatenate([params["b_real"] - params["b_imag"],
                                 params["b_real"] + params["b_imag"]])   # (c2,)
    bias_cols = jnp.tile(bias_base, sh * sw).reshape(1, c2p)

    grid = (mp // tm_eff,)
    mm_in_specs = [
        pl.BlockSpec((tm_eff, kp), lambda i: (i, 0)),
        pl.BlockSpec((kp, c2p), lambda i: (0, 0)),
        pl.BlockSpec((1, c2p), lambda i: (0, 0)),
    ]
    mm_params = pltpu.CompilerParams(dimension_semantics=("parallel",))

    if last_layer:
        # Single fused pass: matmul + bias + phase*tanh(mag) epilogue.
        y = pl.pallas_call(
            _convt_polar_kernel,
            out_shape=jax.ShapeDtypeStruct((mp, c2p), jnp.float32),
            grid=grid, in_specs=mm_in_specs,
            out_specs=pl.BlockSpec((tm_eff, c2p), lambda i: (i, 0)),
            compiler_params=mm_params,
        )(patches, w_c, bias_cols)
        y = y[:m0]
    else:
        conv, pstats = pl.pallas_call(
            _convt_stats_kernel,
            out_shape=(jax.ShapeDtypeStruct((mp, c2p), jnp.bfloat16),
                       jax.ShapeDtypeStruct((mp // tm_eff, 2, c2p), jnp.float32)),
            grid=grid, in_specs=mm_in_specs,
            out_specs=(pl.BlockSpec((tm_eff, c2p), lambda i: (i, 0)),
                       pl.BlockSpec((None, 2, c2p), lambda i: (i, 0, 0))),
            compiler_params=mm_params,
        )(patches, w_c, bias_cols)

        # --- BN stats: pool sub-pixel phases into channels, correct in JAX ---
        sums = jnp.sum(pstats, axis=0)                       # (2, c2p)
        ch_sum = jnp.sum(sums[0].reshape(sh * sw, c2), axis=0)
        ch_sq = jnp.sum(sums[1].reshape(sh * sw, c2), axis=0)

        # Padded rows have all-zero patches -> contribute exactly the bias.
        pad_rows = float(mp - m0)
        ch_sum = ch_sum - pad_rows * sh * sw * bias_base
        ch_sq = ch_sq - pad_rows * sh * sw * bias_base * bias_base

        # Sub-pixel overhang: phase positions past (Hout, Wout) are not part
        # of the output; subtract their contribution from tiny boundary slices.
        ry0 = hout - (qh - 1) * sh
        rx0 = wout - (qw - 1) * sw
        conv_r = conv[:m0].reshape(n, qh, qw, sh, sw, c2)

        def _corr(sl):
            v = sl.astype(jnp.float32)
            ax = tuple(range(v.ndim - 1))
            return jnp.sum(v, axis=ax), jnp.sum(v * v, axis=ax)

        if ry0 < sh:
            s1, s2 = _corr(conv_r[:, qh - 1, :, ry0:, :, :])
            ch_sum, ch_sq = ch_sum - s1, ch_sq - s2
        if rx0 < sw:
            s1, s2 = _corr(conv_r[:, :, qw - 1, :, rx0:, :])
            ch_sum, ch_sq = ch_sum - s1, ch_sq - s2
        if ry0 < sh and rx0 < sw:                            # corner double-count
            s1, s2 = _corr(conv_r[:, qh - 1, qw - 1, ry0:, rx0:, :])
            ch_sum, ch_sq = ch_sum + s1, ch_sq + s2

        cnt = jnp.float32(n * hout * wout)
        eps = 1e-5
        mean = ch_sum / cnt
        var = ch_sq / cnt - mean * mean
        gamma = jnp.concatenate([params["bn_gamma_real"], params["bn_gamma_imag"]])
        beta = jnp.concatenate([params["bn_beta_real"], params["bn_beta_imag"]])
        scale = gamma * lax.rsqrt(var + eps)
        shift = beta - mean * scale
        scale_cols = jnp.tile(scale, sh * sw).reshape(1, c2p)
        shift_cols = jnp.tile(shift, sh * sw).reshape(1, c2p)

        # BN apply + LeakyReLU, lane-dense blocks, in place on the conv buffer.
        y = pl.pallas_call(
            _bn_lrelu_kernel,
            out_shape=jax.ShapeDtypeStruct((mp, c2p), jnp.bfloat16),
            grid=grid,
            in_specs=[pl.BlockSpec((tm_eff, c2p), lambda i: (i, 0)),
                      pl.BlockSpec((1, c2p), lambda i: (0, 0)),
                      pl.BlockSpec((1, c2p), lambda i: (0, 0))],
            out_specs=pl.BlockSpec((tm_eff, c2p), lambda i: (i, 0)),
            input_output_aliases={0: 0},
            compiler_params=mm_params,
        )(conv, scale_cols, shift_cols)
        y = y[:m0].astype(jnp.float32)

    # Depth-to-space: (N, Qh, Qw, sh, sw, 2, Cout) -> (N, Cout, Hout, Wout, 2).
    y = y.reshape(n, qh, qw, sh, sw, 2, cout)
    y = jnp.transpose(y, (0, 1, 3, 2, 4, 5, 6)).reshape(n, qh * sh, qw * sw, 2, cout)
    y = y[:, :hout, :wout]
    return jnp.transpose(y, (0, 4, 1, 2, 3))


# --------------------------------------------------------------------------
# Pure-JAX reference (for correctness check)
# --------------------------------------------------------------------------

def _ref_convt_one(x_nhwc, w, b, stride, padding, output_padding):
    kh, kw = w.shape[2], w.shape[3]
    wf = jnp.transpose(w[:, :, ::-1, ::-1], (2, 3, 0, 1))   # HWIO
    y = lax.conv_general_dilated(
        x_nhwc, wf, window_strides=(1, 1),
        padding=[(kh - 1 - padding[0], kh - 1 - padding[0] + output_padding[0]),
                 (kw - 1 - padding[1], kw - 1 - padding[1] + output_padding[1])],
        lhs_dilation=stride, rhs_dilation=(1, 1),
        dimension_numbers=('NHWC', 'HWIO', 'NHWC'))
    return y + b


def decoder_forward_ref(x, params, *, filter_size, stride_size, padding,
                        output_padding, last_layer=False):
    xr = jnp.transpose(x[..., 0], (0, 2, 3, 1)).astype(jnp.float32)
    xi = jnp.transpose(x[..., 1], (0, 2, 3, 1)).astype(jnp.float32)
    f = functools.partial(_ref_convt_one, stride=stride_size, padding=padding,
                          output_padding=output_padding)
    cr = f(xr, params["w_real"], params["b_real"]) - f(xi, params["w_imag"], params["b_imag"])
    ci = f(xr, params["w_imag"], params["b_imag"]) + f(xi, params["w_real"], params["b_real"])
    if not last_layer:
        eps = 1e-5

        def bn(c, g, b):
            mean = jnp.mean(c, axis=(0, 1, 2))
            var = jnp.var(c, axis=(0, 1, 2))
            y = (c - mean) * lax.rsqrt(var + eps) * g + b
            return jnp.where(y >= 0, y, 0.01 * y)

        yr = bn(cr, params["bn_gamma_real"], params["bn_beta_real"])
        yi = bn(ci, params["bn_gamma_imag"], params["bn_beta_imag"])
    else:
        def polar(c):
            a = jnp.abs(c)
            return (c / (a + 1e-8)) * jnp.tanh(a)

        yr, yi = polar(cr), polar(ci)
    yr = jnp.transpose(yr, (0, 3, 1, 2))
    yi = jnp.transpose(yi, (0, 3, 1, 2))
    return jnp.stack([yr, yi], axis=-1)


# --------------------------------------------------------------------------

def _make_params(key, cin, cout, filt):
    keys = jax.random.split(key, 8)
    fan = cin * filt[0] * filt[1]
    return {
        "w_real": jax.random.normal(keys[0], (cin, cout, filt[0], filt[1]),
                                    jnp.float32) / jnp.sqrt(float(fan)),
        "w_imag": jax.random.normal(keys[1], (cin, cout, filt[0], filt[1]),
                                    jnp.float32) / jnp.sqrt(float(fan)),
        "b_real": 0.1 * jax.random.normal(keys[2], (cout,), jnp.float32),
        "b_imag": 0.1 * jax.random.normal(keys[3], (cout,), jnp.float32),
        "bn_gamma_real": 1.0 + 0.1 * jax.random.normal(keys[4], (cout,), jnp.float32),
        "bn_beta_real": 0.1 * jax.random.normal(keys[5], (cout,), jnp.float32),
        "bn_gamma_imag": 1.0 + 0.1 * jax.random.normal(keys[6], (cout,), jnp.float32),
        "bn_beta_imag": 0.05 * jnp.ones((cout,), jnp.float32),
    }


if __name__ == "__main__":
    key = jax.random.PRNGKey(0)
    N, CIN, H, W = 2, 4, 8, 8
    FILTER = (7, 5)
    STRIDE = (2, 2)
    PAD = (0, 0)
    OPAD = (0, 0)
    kwargs = dict(filter_size=FILTER, stride_size=STRIDE,
                  padding=PAD, output_padding=OPAD)

    kx, kp1, kp2 = jax.random.split(key, 3)
    x = jax.random.normal(kx, (N, CIN, H, W, 2), dtype=jnp.float32)

    TOL = dict(rtol=3e-2, atol=3e-2)   # bf16 MXU operands / bf16 intermediate

    fwd = jax.jit(functools.partial(decoder_forward, last_layer=False, **kwargs))
    fwd_last = jax.jit(functools.partial(decoder_forward, last_layer=True, **kwargs))

    # 1) Default Decoder path: convT -> CBN -> LeakyReLU, lane-dense
    #    (sh*sw*2*Cout = 128 matmul columns).
    params16 = _make_params(kp1, CIN, 16, FILTER)
    out = jax.block_until_ready(fwd(x, params16))
    ref = decoder_forward_ref(x, params16, last_layer=False, **kwargs)
    assert out.shape == ref.shape, (out.shape, ref.shape)
    assert jnp.allclose(out, ref, **TOL), float(jnp.max(jnp.abs(out - ref)))

    # 2) last_layer=True path: single fused matmul + phase*tanh pass.
    out_last = jax.block_until_ready(fwd_last(x, params16))
    ref_last = decoder_forward_ref(x, params16, last_layer=True, **kwargs)
    assert jnp.allclose(out_last, ref_last, **TOL), \
        float(jnp.max(jnp.abs(out_last - ref_last)))

    # 3) BN path with sh*sw*2*Cout = 96 (not a multiple of 128) to exercise the
    #    full-extent (non-128) column fallback.
    params12 = _make_params(kp2, CIN, 12, FILTER)
    out_fb = jax.block_until_ready(fwd(x, params12))
    ref_fb = decoder_forward_ref(x, params12, last_layer=False, **kwargs)
    assert jnp.allclose(out_fb, ref_fb, **TOL), \
        float(jnp.max(jnp.abs(out_fb - ref_fb)))

    print("KERNEL_OK")
</pallas_src>

<mosaic_0001>
module attributes {stable_mosaic.version = 11 : i64} {
  func.func @_convt_stats_kernel(%arg0: i32, %arg1: memref<256x128xbf16, #tpu.memory_space<vmem>>, %arg2: memref<128x128xbf16, #tpu.memory_space<vmem>>, %arg3: memref<1x128xf32, #tpu.memory_space<vmem>>, %arg4: memref<256x128xbf16, #tpu.memory_space<vmem>>, %arg5: memref<1x2x128xf32, #tpu.memory_space<vmem>>) attributes {dimension_semantics = [#tpu.dimension_semantics<parallel>], iteration_bounds = array<i64: 1>, scalar_prefetch = 0 : i64, scratch_operands = 0 : i64, tpu.core_type = #tpu.core_type<tc>, window_params = [{transform_indices = @transform_0, window_bounds = array<i64: 256, 128>}, {pipeline_mode = #tpu.pipeline_mode<synchronous>, transform_indices = @transform_1, window_bounds = array<i64: 128, 128>}, {pipeline_mode = #tpu.pipeline_mode<synchronous>, transform_indices = @transform_2, window_bounds = array<i64: 1, 128>}, {transform_indices = @transform_3, window_bounds = array<i64: 256, 128>}, {transform_indices = @transform_4, window_bounds = array<i64: 1, 2, 128>}]} {
    %c0 = arith.constant 0 : index
    %c0_0 = arith.constant 0 : index
    %0 = vector.load %arg1[%c0, %c0_0] : memref<256x128xbf16, #tpu.memory_space<vmem>>, vector<256x128xbf16>
    %c0_1 = arith.constant 0 : index
    %c0_2 = arith.constant 0 : index
    %1 = vector.load %arg2[%c0_1, %c0_2] : memref<128x128xbf16, #tpu.memory_space<vmem>>, vector<128x128xbf16>
    %cst = arith.constant dense<0.000000e+00> : vector<256x128xf32>
    %2 = tpu.matmul %0, %1, %cst {dimension_numbers = #tpu.dot_dimension_numbers<[1], [0], [0], [1], [0, 0, 1, 1], [], []>} : vector<256x128xbf16>, vector<128x128xbf16>, vector<256x128xf32> -> vector<256x128xf32>
    %c0_3 = arith.constant 0 : index
    %c0_4 = arith.constant 0 : index
    %3 = vector.load %arg3[%c0_3, %c0_4] : memref<1x128xf32, #tpu.memory_space<vmem>>, vector<1x128xf32>
    %4 = vector.broadcast %3 : vector<1x128xf32> to vector<256x128xf32>
    %5 = arith.addf %2, %4 : vector<256x128xf32>
    %6 = arith.truncf %5 : vector<256x128xf32> to vector<256x128xbf16>
    %c0_5 = arith.constant 0 : index
    %c0_6 = arith.constant 0 : index
    %7 = vector.load %arg4[%c0_5, %c0_6] : memref<256x128xbf16, #tpu.memory_space<vmem>>, vector<256x128xbf16>
    tpu.vector_store %arg4[%c0_5, %c0_6], %6 {strides = array<i32>} : memref<256x128xbf16, #tpu.memory_space<vmem>>, vector<256x128xbf16>,
    %cst_7 = arith.constant dense<0.000000e+00> : vector<128xf32>
    %8 = vector.multi_reduction <add>, %5, %cst_7 [0] : vector<256x128xf32> to vector<128xf32>
    %9 = vector.shape_cast %8 : vector<128xf32> to vector<1x128xf32>
    %c0_8 = arith.constant 0 : index
    %c0_9 = arith.constant 0 : index
    %c0_10 = arith.constant 0 : index
    %10 = vector.load %arg5[%c0_8, %c0_9, %c0_10] : memref<1x2x128xf32, #tpu.memory_space<vmem>>, vector<1x1x128xf32>
    %11 = vector.shape_cast %10 : vector<1x1x128xf32> to vector<1x128xf32>
    %12 = vector.shape_cast %9 : vector<1x128xf32> to vector<1x1x128xf32>
    tpu.vector_store %arg5[%c0_8, %c0_9, %c0_10], %12 {strides = array<i32>} : memref<1x2x128xf32, #tpu.memory_space<vmem>>, vector<1x1x128xf32>,
    %13 = arith.mulf %5, %5 : vector<256x128xf32>
    %cst_11 = arith.constant dense<0.000000e+00> : vector<128xf32>
    %14 = vector.multi_reduction <add>, %13, %cst_11 [0] : vector<256x128xf32> to vector<128xf32>
    %15 = vector.shape_cast %14 : vector<128xf32> to vector<1x128xf32>
    %c0_12 = arith.constant 0 : index
    %c1 = arith.constant 1 : index
    %c0_13 = arith.constant 0 : index
    %16 = vector.load %arg5[%c0_12, %c1, %c0_13] : memref<1x2x128xf32, #tpu.memory_space<vmem>>, vector<1x1x128xf32>
    %17 = vector.shape_cast %16 : vector<1x1x128xf32> to vector<1x128xf32>
    %18 = vector.shape_cast %15 : vector<1x128xf32> to vector<1x1x128xf32>
    tpu.vector_store %arg5[%c0_12, %c1, %c0_13], %18 {strides = array<i32>} : memref<1x2x128xf32, #tpu.memory_space<vmem>>, vector<1x1x128xf32>,
    return
  }
  func.func @transform_0(%arg0: i32) -> (i32, i32) {
    %c0_i32 = arith.constant 0 : i32
    %c0_i32_0 = arith.constant 0 : i32
    return %arg0, %c0_i32 : i32, i32
  }
  func.func @transform_1(%arg0: i32) -> (i32, i32) {
    %c0_i32 = arith.constant 0 : i32
    %c0_i32_0 = arith.constant 0 : i32
    %c0_i32_1 = arith.constant 0 : i32
    return %c0_i32, %c0_i32_0 : i32, i32
  }
  func.func @transform_2(%arg0: i32) -> (i32, i32) {
    %c0_i32 = arith.constant 0 : i32
    %c0_i32_0 = arith.constant 0 : i32
    %c0_i32_1 = arith.constant 0 : i32
    return %c0_i32, %c0_i32_0 : i32, i32
  }
  func.func @transform_3(%arg0: i32) -> (i32, i32) {
    %c0_i32 = arith.constant 0 : i32
    %c0_i32_0 = arith.constant 0 : i32
    return %arg0, %c0_i32 : i32, i32
  }
  func.func @transform_4(%arg0: i32) -> (i32, i32, i32) {
    %c0_i32 = arith.constant 0 : i32
    %c0_i32_0 = arith.constant 0 : i32
    %c0_i32_1 = arith.constant 0 : i32
    return %arg0, %c0_i32, %c0_i32_0 : i32, i32, i32
  }
}

module attributes {stable_mosaic.version = 11 : i64} {
  func.func @_bn_lrelu_kernel(%arg0: i32, %arg1: memref<256x128xbf16, #tpu.memory_space<vmem>>, %arg2: memref<1x128xf32, #tpu.memory_space<vmem>>, %arg3: memref<1x128xf32, #tpu.memory_space<vmem>>, %arg4: memref<256x128xbf16, #tpu.memory_space<vmem>>) attributes {dimension_semantics = [#tpu.dimension_semantics<parallel>], iteration_bounds = array<i64: 1>, scalar_prefetch = 0 : i64, scratch_operands = 0 : i64, tpu.core_type = #tpu.core_type<tc>, window_params = [{transform_indices = @transform_0, window_bounds = array<i64: 256, 128>}, {pipeline_mode = #tpu.pipeline_mode<synchronous>, transform_indices = @transform_1, window_bounds = array<i64: 1, 128>}, {pipeline_mode = #tpu.pipeline_mode<synchronous>, transform_indices = @transform_2, window_bounds = array<i64: 1, 128>}, {transform_indices = @transform_3, window_bounds = array<i64: 256, 128>}]} {
    %c0 = arith.constant 0 : index
    %c0_0 = arith.constant 0 : index
    %0 = vector.load %arg1[%c0, %c0_0] : memref<256x128xbf16, #tpu.memory_space<vmem>>, vector<256x128xbf16>
    %1 = arith.extf %0 : vector<256x128xbf16> to vector<256x128xf32>
    %c0_1 = arith.constant 0 : index
    %c0_2 = arith.constant 0 : index
    %2 = vector.load %arg2[%c0_1, %c0_2] : memref<1x128xf32, #tpu.memory_space<vmem>>, vector<1x128xf32>
    %3 = vector.broadcast %2 : vector<1x128xf32> to vector<256x128xf32>
    %4 = arith.mulf %1, %3 : vector<256x128xf32>
    %c0_3 = arith.constant 0 : index
    %c0_4 = arith.constant 0 : index
    %5 = vector.load %arg3[%c0_3, %c0_4] : memref<1x128xf32, #tpu.memory_space<vmem>>, vector<1x128xf32>
    %6 = vector.broadcast %5 : vector<1x128xf32> to vector<256x128xf32>
    %7 = arith.addf %4, %6 : vector<256x128xf32>
    %cst = arith.constant 0.000000e+00 : f32
    %8 = vector.broadcast %cst : f32 to vector<256x128xf32>
    %9 = arith.cmpf oge, %7, %8 : vector<256x128xf32>
    %cst_5 = arith.constant 0.00999999977 : f32
    %10 = vector.broadcast %cst_5 : f32 to vector<256x128xf32>
    %11 = arith.mulf %10, %7 : vector<256x128xf32>
    %12 = arith.select %9, %7, %11 : vector<256x128xi1>, vector<256x128xf32>
    %13 = arith.truncf %12 : vector<256x128xf32> to vector<256x128xbf16>
    %c0_6 = arith.constant 0 : index
    %c0_7 = arith.constant 0 : index
    %14 = vector.load %arg4[%c0_6, %c0_7] : memref<256x128xbf16, #tpu.memory_space<vmem>>, vector<256x128xbf16>
    tpu.vector_store %arg4[%c0_6, %c0_7], %13 {strides = array<i32>} : memref<256x128xbf16, #tpu.memory_space<vmem>>, vector<256x128xbf16>,
    return
  }
  func.func @transform_0(%arg0: i32) -> (i32, i32) {
    %c0_i32 = arith.constant 0 : i32
    %c0_i32_0 = arith.constant 0 : i32
    return %arg0, %c0_i32 : i32, i32
  }
  func.func @transform_1(%arg0: i32) -> (i32, i32) {
    %c0_i32 = arith.constant 0 : i32
    %c0_i32_0 = arith.constant 0 : i32
    %c0_i32_1 = arith.constant 0 : i32
    return %c0_i32, %c0_i32_0 : i32, i32
  }
  func.func @transform_2(%arg0: i32) -> (i32, i32) {
    %c0_i32 = arith.constant 0 : i32
    %c0_i32_0 = arith.constant 0 : i32
    %c0_i32_1 = arith.constant 0 : i32
    return %c0_i32, %c0_i32_0 : i32, i32
  }
  func.func @transform_3(%arg0: i32) -> (i32, i32) {
    %c0_i32 = arith.constant 0 : i32
    %c0_i32_0 = arith.constant 0 : i32
    return %arg0, %c0_i32 : i32, i32
  }
}

</mosaic_0001>

<bundles_post_ra>
// kernel: tile.18
= control target key start
LH: loop header
LB: loop body
LE: loop exit
PB: predicated region body
PF: predicated region fallthrough
CT: control target
= control target key end

     0   :  { %s22_s0 = inlined_call_operand.vmem [shape: f32[32], index: 0, kind: input, shape index: {}]   ;;  %s23_s1 = inlined_call_operand.vmem [shape: f32[4,32], index: 1, kind: output, shape index: {}]  }
   0x1   :  { %v4_v0 = vld [vmem:[%s22_s0] ss:$0 sm:$0xff] }
   0x2   :  { %5 = vst [vmem:[%s23_s1] sm:$0xf] %v4_v0 }

// kernel: tile.19
= control target key start
LH: loop header
LB: loop body
LE: loop exit
PB: predicated region body
PF: predicated region fallthrough
CT: control target
= control target key end

     0   :  { %vm7_vm0 = vcmask 261120   ;;  %s37_s8 = smov 32   ;;  %s38_s9 = smov 64   ;;  %vm13_vm1 = vcmask 1048320   ;;  %vm19_vm2 = vcmask 785920   ;;  %vm25_vm3 = vcmask 523520   ;;  %s55_s0 = inlined_call_operand.vmem [shape: f32[4,32], index: 0, kind: input, shape index: {}]   ;;  %s56_s1 = inlined_call_operand.vmem [shape: f32[1,128], index: 1, kind: output, shape index: {}]  }
   0x1   :  { %v4_v0 = vld [vmem:[%s55_s0] sm:$0xf]  ;;  %s36_s0 = smov 96  }
   0x2   :  { %5 = vst [vmem:[#allocation1] sm:$0xf] %v4_v0 }
   0x9   :  { %v10_v1 = vld [vmem:[#allocation1 + $0x3] sm:$0x1]   ;;  %v22_v2 = vld [vmem:[#allocation1 + $0x1] sm:$0x1]   ;;  %v6_v3 = vld [vmem:[#allocation1] sm:$0x1]  }
   0xa   :  { %11 = vrot.lane.b32.xlu0 %v10_v1, %s36_s0  ;;  %23 = vrot.lane.b32.xlu1 %v22_v2, %s37_s8  ;;  %v16_v4 = vld [vmem:[#allocation1 + $0x2] sm:$0x1]   ;;  %8 = vst.msk [vmem:[#allocation0] sm:$0x1] %vm7_vm0, %v6_v3  }
   0xe   :  { %17 = vrot.lane.b32.xlu0 %v16_v4, %s38_s9 }
  0x7c   :  { %v12_v5 = vpop.permute.xlu0 %11   ;;  %v24_v6 = vpop.permute.xlu1 %23  }
  0x7d   :  { %14 = vst.msk [vmem:[#allocation0] sm:$0x1] %vm13_vm1, %v12_v5  }
  0x80   :  { %v18_v7 = vpop.permute.xlu0 %17  }
  0x81   :  { %20 = vst.msk [vmem:[#allocation0] sm:$0x1] %vm19_vm2, %v18_v7  }
  0x82   :  { %26 = vst.msk [vmem:[#allocation0] sm:$0x1] %vm25_vm3, %v24_v6  }
  0x89   :  { %v30_v8 = vld [vmem:[#allocation0] sm:$0x1] }
  0x8a   :  { %32 = vst [vmem:[%s56_s1] sm:$0x1] %v30_v8 }

// kernel: decoder_forward.2
= control target key start
LH: loop header
LB: loop body
LE: loop exit
PB: predicated region body
PF: predicated region fallthrough
CT: control target
= control target key end

     0   :  { %s1221_s1 = inlined_call_operand.vmem [shape: bf16[128,128], index: 1, kind: input, shape index: {}]   ;;  %s1222_s0 = inlined_call_operand.vmem [shape: bf16[256,128], index: 0, kind: input, shape index: {}]   ;;  %s1223_s2 = inlined_call_operand.vmem [shape: f32[1,128], index: 2, kind: input, shape index: {}]   ;;  %s1224_s3 = inlined_call_operand.vmem [shape: bf16[256,128], index: 3, kind: output, shape index: {0}]   ;;  %s1225_s4 = inlined_call_operand.vmem [shape: f32[1,2,128], index: 4, kind: output, shape index: {1}]  }
   0x1   :  { %v925_v0 = vld [vmem:[%s1221_s1] sm:$0xff]   ;;  %v926_v1 = vld [vmem:[%s1221_s1 + $0x8] sm:$0xff]   ;;  %v927_v2 = vld [vmem:[%s1221_s1 + $0x10] sm:$0xff]  }
   0x2   :  { %861 = vmatprep.subr.bf16.mxu0 %v925_v0  ;;  %909 = vmatprep.subr.bf16.mxu1 %v925_v0  ;;  %v928_v3 = vld [vmem:[%s1221_s1 + $0x18] sm:$0xff]   ;;  %v933_v4 = vld [vmem:[%s1222_s0] sm:$0xff]   ;;  %v930_v6 = vld [vmem:[%s1221_s1 + $0x28] sm:$0xff]  }
   0x3   :  { %862 = vmatpush3.bf16.msra.mxu0 %v925_v0  ;;  %917 = vmatpush3.bf16.msra.mxu1 %v925_v0  ;;  %v929_v5 = vld [vmem:[%s1221_s1 + $0x20] sm:$0xff]   ;;  %v931_v8 = vld [vmem:[%s1221_s1 + $0x30] sm:$0xff]   ;;  %v932_v9 = vld [vmem:[%s1221_s1 + $0x38] sm:$0xff]  }
   0x4   :  { %863 = vmatprep.subr.bf16.mxu0 %v926_v1  ;;  %910 = vmatprep.subr.bf16.mxu1 %v926_v1  ;;  %v941_v7 = vld [vmem:[%s1222_s0 + $0x40] sm:$0xff]   ;;  %v934_v10 = vld [vmem:[%s1222_s0 + $0x8] sm:$0xff]   ;;  %v935_v12 = vld [vmem:[%s1222_s0 + $0x10] sm:$0xff]  }
   0x5   :  { %877 = vmatprep.mubr.bf16.mxu0 %v933_v4  ;;  %893 = vmatprep.mubr.bf16.mxu1 %v941_v7  ;;  %v942_v11 = vld [vmem:[%s1222_s0 + $0x48] sm:$0xff]   ;;  %v943_v13 = vld [vmem:[%s1222_s0 + $0x50] sm:$0xff]   ;;  %v936_v14 = vld [vmem:[%s1222_s0 + $0x18] sm:$0xff]  }
   0x6   :  { %v944_v15 = vld [vmem:[%s1222_s0 + $0x58] sm:$0xff]   ;;  %v937_v16 = vld [vmem:[%s1222_s0 + $0x20] sm:$0xff]   ;;  %v938_v18 = vld [vmem:[%s1222_s0 + $0x28] sm:$0xff]  }
   0x7   :  { %864 = vmatpush3.bf16.msra.mxu0 %v926_v1  ;;  %918 = vmatpush3.bf16.msra.mxu1 %v926_v1  ;;  %v945_v17 = vld [vmem:[%s1222_s0 + $0x60] sm:$0xff]   ;;  %v946_v19 = vld [vmem:[%s1222_s0 + $0x68] sm:$0xff]   ;;  %v939_v20 = vld [vmem:[%s1222_s0 + $0x30] sm:$0xff]  }
   0x8   :  { %865 = vmatprep.subr.bf16.mxu0 %v927_v2  ;;  %911 = vmatprep.subr.bf16.mxu1 %v927_v2  ;;  %v947_v21 = vld [vmem:[%s1222_s0 + $0x70] sm:$0xff]   ;;  %v940_v22 = vld [vmem:[%s1222_s0 + $0x38] sm:$0xff]   ;;  %v1049_v24 = vld [vmem:[%s1223_s2] ss:$0 sm:$0xff] }
   0x9   :  { %v948_v23 = vld [vmem:[%s1222_s0 + $0x78] sm:$0xff]  }
   0xb   :  { %866 = vmatpush3.bf16.msra.mxu0 %v927_v2  ;;  %919 = vmatpush3.bf16.msra.mxu1 %v927_v2 }
   0xc   :  { %867 = vmatprep.subr.bf16.mxu0 %v928_v3  ;;  %912 = vmatprep.subr.bf16.mxu1 %v928_v3 }
   0xf   :  { %868 = vmatpush3.bf16.msra.mxu0 %v928_v3  ;;  %920 = vmatpush3.bf16.msra.mxu1 %v928_v3 }
  0x10   :  { %869 = vmatprep.subr.bf16.mxu0 %v929_v5  ;;  %913 = vmatprep.subr.bf16.mxu1 %v929_v5 }
  0x13   :  { %870 = vmatpush3.bf16.msra.mxu0 %v929_v5  ;;  %921 = vmatpush3.bf16.msra.mxu1 %v929_v5 }
  0x14   :  { %871 = vmatprep.subr.bf16.mxu0 %v930_v6  ;;  %914 = vmatprep.subr.bf16.mxu1 %v930_v6 }
  0x17   :  { %872 = vmatpush3.bf16.msra.mxu0 %v930_v6  ;;  %922 = vmatpush3.bf16.msra.mxu1 %v930_v6 }
  0x18   :  { %873 = vmatprep.subr.bf16.mxu0 %v931_v8  ;;  %915 = vmatprep.subr.bf16.mxu1 %v931_v8 }
  0x1b   :  { %874 = vmatpush3.bf16.msra.mxu0 %v931_v8  ;;  %923 = vmatpush3.bf16.msra.mxu1 %v931_v8 }
  0x1c   :  { %875 = vmatprep.subr.bf16.mxu0 %v932_v9  ;;  %916 = vmatprep.subr.bf16.mxu1 %v932_v9 }
  0x1f   :  { %876 = vmatpush3.bf16.msra.mxu0 %v932_v9  ;;  %924 = vmatpush3.bf16.msra.mxu1 %v932_v9 }
  0x22   :  { %878 = vmatmul.mubr.bf16.vlgmr.msra.gmra.mrb[0].mxu0 %v934_v10  ;;  %894 = vmatmul.mubr.bf16.vlgmr.msra.gmra.mrb[0].mxu1 %v942_v11 }
  0x23   :  { %881 = vmatprep.mubr.bf16.mxu0 %v935_v12  ;;  %897 = vmatprep.mubr.bf16.mxu1 %v943_v13 }
  0x2a   :  { %882 = vmatmul.mubr.bf16.gmra.mrb[4].mxu0 %v936_v14  ;;  %898 = vmatmul.mubr.bf16.gmra.mrb[4].mxu1 %v944_v15 }
  0x2b   :  { %885 = vmatprep.mubr.bf16.mxu0 %v937_v16  ;;  %901 = vmatprep.mubr.bf16.mxu1 %v945_v17 }
  0x32   :  { %886 = vmatmul.mubr.bf16.gmra.mrb[8].mxu0 %v938_v18  ;;  %902 = vmatmul.mubr.bf16.gmra.mrb[8].mxu1 %v946_v19 }
  0x33   :  { %889 = vmatprep.mubr.bf16.mxu0 %v939_v20  ;;  %905 = vmatprep.mubr.bf16.mxu1 %v947_v21 }
  0x3a   :  { %890 = vmatmul.mubr.bf16.gmra.mrb[12].mxu0 %v940_v22  ;;  %906 = vmatmul.mubr.bf16.gmra.mrb[12].mxu1 %v948_v23 }
  0xf5   :  { %v879_v25 = vpop.f32.mrb[0].mxu0  ;;  %v895_v26 = vpop.f32.mrb[0].mxu1 }
  0xf6   :  { %v250_v27 = vpop.f32.mrb[1].mxu0  ;;  %v1052_v28 = vadd.f32 %v895_v26, %v1049_v24  ;;  %v314_v29 = vpop.f32.mrb[1].mxu1  ;;  %v259_v34 = vadd.f32 %v879_v25, %v1049_v24 }
  0xf7   :  { %v251_v30 = vadd.f32 %v1049_v24, %v250_v27  ;;  %v880_v31 = vpop.f32.mrb[2].mxu0  ;;  %v1056_v32 = vadd.f32 %v1049_v24, %v314_v29  ;;  %v896_v33 = vpop.f32.mrb[2].mxu1 }
  0xf8   :  { %v262_v35 = vadd.f32 %v880_v31, %v1049_v24  ;;  %v253_v36 = vpop.f32.mrb[3].mxu0  ;;  %v1061_v37 = vadd.f32 %v896_v33, %v1049_v24  ;;  %v317_v38 = vpop.f32.mrb[3].mxu1  ;;  %v577_v48 = vmul.f32 %v259_v34, %v259_v34 }
  0xf9   :  { %v254_v39 = vadd.f32 %v1049_v24, %v253_v36  ;;  %v1065_v40 = vadd.f32 %v1049_v24, %v317_v38  ;;  %v575_v41 = vmul.f32 %v251_v30, %v251_v30 }
  0xfa   :  { %v750_v42 = vpack.c.bf16 %v262_v35, %v259_v34  ;;  %v790_v43 = vpack.c.bf16 %v1061_v37, %v1052_v28  ;;  %v578_v56 = vmul.f32 %v262_v35, %v262_v35 }
  0xfb   :  { %v745_v44 = vpack.c.bf16 %v254_v39, %v251_v30  ;;  %v537_v45 = vadd.f32 %v254_v39, %v251_v30  ;;  %v576_v46 = vmul.f32 %v254_v39, %v254_v39  ;;  %v785_v47 = vpack.c.bf16 %v1065_v40, %v1056_v32 }
  0xfc   :  { %822 = vst [vmem:[%s1224_s3 + $0x8] sm:$0xff] %v750_v42   ;;  %830 = vst [vmem:[%s1224_s3 + $0x48] sm:$0xff] %v790_v43  }
  0xfd   :  { %746 = vst [vmem:[%s1224_s3] sm:$0xff] %v745_v44   ;;  %v538_v49 = vadd.f32 %v537_v45, %v259_v34  ;;  %v607_v50 = vadd.f32 %v576_v46, %v575_v41  ;;  %v883_v51 = vpop.f32.mrb[4].mxu0  ;;  %829 = vst [vmem:[%s1224_s3 + $0x40] sm:$0xff] %v785_v47   ;;  %v899_v52 = vpop.f32.mrb[4].mxu1 }
  0xfe   :  { %v266_v53 = vpop.f32.mrb[5].mxu0  ;;  %v1084_v54 = vadd.f32 %v899_v52, %v1049_v24  ;;  %v330_v55 = vpop.f32.mrb[5].mxu1  ;;  %v275_v62 = vadd.f32 %v883_v51, %v1049_v24 }
  0xff   :  { %v608_v57 = vadd.f32 %v607_v50, %v577_v48  ;;  %v267_v58 = vadd.f32 %v1049_v24, %v266_v53  ;;  %v539_v59 = vadd.f32 %v538_v49, %v262_v35  ;;  %v884_v60 = vpop.f32.mrb[6].mxu0  ;;  %v900_v61 = vpop.f32.mrb[6].mxu1  ;;  %v1094_v8 = vadd.f32 %v1049_v24, %v330_v55 }
 0x100   :  { %v278_v63 = vadd.f32 %v884_v60, %v1049_v24  ;;  %v269_v0 = vpop.f32.mrb[7].mxu0  ;;  %v1090_v1 = vadd.f32 %v900_v61, %v1049_v24  ;;  %v333_v2 = vpop.f32.mrb[7].mxu1  ;;  %v581_v15 = vmul.f32 %v275_v62, %v275_v62 }
 0x101   :  { %v540_v3 = vadd.f32 %v539_v59, %v267_v58  ;;  %v579_v4 = vmul.f32 %v267_v58, %v267_v58  ;;  %v609_v5 = vadd.f32 %v608_v57, %v578_v56  ;;  %v270_v6 = vadd.f32 %v1049_v24, %v269_v0 }
 0x102   :  { %v760_v7 = vpack.c.bf16 %v278_v63, %v275_v62  ;;  %v800_v9 = vpack.c.bf16 %v1090_v1, %v1084_v54  ;;  %v1105_v14 = vadd.f32 %v1049_v24, %v333_v2  ;;  %v582_v25 = vmul.f32 %v278_v63, %v278_v63 }
 0x103   :  { %v610_v10 = vadd.f32 %v609_v5, %v579_v4  ;;  %v755_v11 = vpack.c.bf16 %v270_v6, %v267_v58  ;;  %v541_v12 = vadd.f32 %v540_v3, %v270_v6  ;;  %v580_v13 = vmul.f32 %v270_v6, %v270_v6 }
 0x104   :  { %824 = vst [vmem:[%s1224_s3 + $0x18] sm:$0xff] %v760_v7   ;;  %832 = vst [vmem:[%s1224_s3 + $0x58] sm:$0xff] %v800_v9   ;;  %v795_v21 = vpack.c.bf16 %v1105_v14, %v1094_v8 }
 0x105   :  { %823 = vst [vmem:[%s1224_s3 + $0x10] sm:$0xff] %v755_v11   ;;  %v542_v16 = vadd.f32 %v541_v12, %v275_v62  ;;  %v611_v17 = vadd.f32 %v610_v10, %v580_v13  ;;  %v887_v18 = vpop.f32.mrb[8].mxu0  ;;  %v903_v19 = vpop.f32.mrb[8].mxu1 }
 0x106   :  { %v282_v20 = vpop.f32.mrb[9].mxu0  ;;  %v1113_v22 = vadd.f32 %v903_v19, %v1049_v24  ;;  %v346_v23 = vpop.f32.mrb[9].mxu1  ;;  %v291_v33 = vadd.f32 %v887_v18, %v1049_v24  ;;  %831 = vst [vmem:[%s1224_s3 + $0x50] sm:$0xff] %v795_v21  }
 0x107   :  { %v612_v26 = vadd.f32 %v611_v17, %v581_v15  ;;  %v283_v27 = vadd.f32 %v1049_v24, %v282_v20  ;;  %v543_v29 = vadd.f32 %v542_v16, %v278_v63  ;;  %v888_v30 = vpop.f32.mrb[10].mxu0  ;;  %v904_v31 = vpop.f32.mrb[10].mxu1  ;;  %v1126_v45 = vadd.f32 %v1049_v24, %v346_v23 }
 0x108   :  { %v294_v34 = vadd.f32 %v888_v30, %v1049_v24  ;;  %v285_v35 = vpop.f32.mrb[11].mxu0  ;;  %v1122_v36 = vadd.f32 %v904_v31, %v1049_v24  ;;  %v349_v38 = vpop.f32.mrb[11].mxu1  ;;  %v585_v52 = vmul.f32 %v291_v33, %v291_v33 }
 0x109   :  { %v544_v39 = vadd.f32 %v543_v29, %v283_v27  ;;  %v583_v41 = vmul.f32 %v283_v27, %v283_v27  ;;  %v613_v42 = vadd.f32 %v612_v26, %v582_v25  ;;  %v286_v43 = vadd.f32 %v1049_v24, %v285_v35 }
 0x10a   :  { %v770_v44 = vpack.c.bf16 %v294_v34, %v291_v33  ;;  %v810_v46 = vpack.c.bf16 %v1122_v36, %v1113_v22  ;;  %v1137_v51 = vadd.f32 %v1049_v24, %v349_v38  ;;  %v586_v62 = vmul.f32 %v294_v34, %v294_v34 }
 0x10b   :  { %v614_v47 = vadd.f32 %v613_v42, %v583_v41  ;;  %v765_v48 = vpack.c.bf16 %v286_v43, %v283_v27  ;;  %v545_v49 = vadd.f32 %v544_v39, %v286_v43  ;;  %v584_v50 = vmul.f32 %v286_v43, %v286_v43 }
 0x10c   :  { %826 = vst [vmem:[%s1224_s3 + $0x28] sm:$0xff] %v770_v44   ;;  %834 = vst [vmem:[%s1224_s3 + $0x68] sm:$0xff] %v810_v46   ;;  %v805_v59 = vpack.c.bf16 %v1137_v51, %v1126_v45  ;;  %v591_v35 = vmul.f32 %v1056_v32, %v1056_v32  ;;  %v592_v42 = vmul.f32 %v1065_v40, %v1065_v40 }
 0x10d   :  { %825 = vst [vmem:[%s1224_s3 + $0x20] sm:$0xff] %v765_v48   ;;  %v546_v53 = vadd.f32 %v545_v49, %v291_v33  ;;  %v615_v55 = vadd.f32 %v614_v47, %v584_v50  ;;  %v891_v56 = vpop.f32.mrb[12].mxu0  ;;  %v907_v57 = vpop.f32.mrb[12].mxu1  ;;  %v593_v43 = vmul.f32 %v1052_v28, %v1052_v28  ;;  %v594_v47 = vmul.f32 %v1061_v37, %v1061_v37 }
 0x10e   :  { %v298_v58 = vpop.f32.mrb[13].mxu0  ;;  %v1145_v60 = vadd.f32 %v907_v57, %v1049_v24  ;;  %v362_v61 = vpop.f32.mrb[13].mxu1  ;;  %v307_v5 = vadd.f32 %v891_v56, %v1049_v24  ;;  %833 = vst [vmem:[%s1224_s3 + $0x60] sm:$0xff] %v805_v59  }
 0x10f   :  { %v616_v63 = vadd.f32 %v615_v55, %v585_v52  ;;  %v299_v0 = vadd.f32 %v1049_v24, %v298_v58  ;;  %v547_v2 = vadd.f32 %v546_v53, %v294_v34  ;;  %v892_v3 = vpop.f32.mrb[14].mxu0  ;;  %v908_v4 = vpop.f32.mrb[14].mxu1  ;;  %v363_v17 = vadd.f32 %v1049_v24, %v362_v61 }
 0x110   :  { %v310_v6 = vadd.f32 %v892_v3, %v1049_v24  ;;  %v301_v7 = vpop.f32.mrb[15].mxu0  ;;  %v1154_v9 = vadd.f32 %v908_v4, %v1049_v24  ;;  %v365_v10 = vpop.f32.mrb[15].mxu1  ;;  %v589_v26 = vmul.f32 %v307_v5, %v307_v5  ;;  %v596_v55 = vmul.f32 %v1105_v14, %v1105_v14 }
 0x111   :  { %v548_v11 = vadd.f32 %v547_v2, %v299_v0  ;;  %v587_v12 = vmul.f32 %v299_v0, %v299_v0  ;;  %v617_v13 = vadd.f32 %v616_v63, %v586_v62  ;;  %v302_v15 = vadd.f32 %v1049_v24, %v301_v7 }
 0x112   :  { %v780_v16 = vpack.c.bf16 %v310_v6, %v307_v5  ;;  %v820_v18 = vpack.c.bf16 %v1154_v9, %v1145_v60  ;;  %v366_v25 = vadd.f32 %v1049_v24, %v365_v10  ;;  %v590_v31 = vmul.f32 %v310_v6, %v310_v6 }
 0x113   :  { %v618_v19 = vadd.f32 %v617_v13, %v587_v12  ;;  %v775_v20 = vpack.c.bf16 %v302_v15, %v299_v0  ;;  %v549_v21 = vadd.f32 %v548_v11, %v302_v15  ;;  %v588_v23 = vmul.f32 %v302_v15, %v302_v15 }
 0x114   :  { %828 = vst [vmem:[%s1224_s3 + $0x38] sm:$0xff] %v780_v16   ;;  %836 = vst [vmem:[%s1224_s3 + $0x78] sm:$0xff] %v820_v18   ;;  %v815_v30 = vpack.c.bf16 %v366_v25, %v363_v17  ;;  %v600_v0 = vmul.f32 %v1137_v51, %v1137_v51  ;;  %v604_v12 = vmul.f32 %v366_v25, %v366_v25 }
 0x115   :  { %827 = vst [vmem:[%s1224_s3 + $0x30] sm:$0xff] %v775_v20   ;;  %v550_v27 = vadd.f32 %v549_v21, %v307_v5  ;;  %v619_v29 = vadd.f32 %v618_v19, %v588_v23 }
 0x116   :  { %835 = vst [vmem:[%s1224_s3 + $0x70] sm:$0xff] %v815_v30  }
 0x117   :  { %v620_v33 = vadd.f32 %v619_v29, %v589_v26  ;;  %v551_v34 = vadd.f32 %v550_v27, %v310_v6 }
 0x119   :  { %v552_v24 = vadd.f32 %v551_v34, %v1056_v32  ;;  %v621_v38 = vadd.f32 %v620_v33, %v590_v31  ;;  %v595_v32 = vmul.f32 %v1094_v8, %v1094_v8 }
 0x11b   :  { %v622_v39 = vadd.f32 %v621_v38, %v591_v35  ;;  %v553_v41 = vadd.f32 %v552_v24, %v1065_v40 }
 0x11d   :  { %v554_v44 = vadd.f32 %v553_v41, %v1052_v28  ;;  %v623_v46 = vadd.f32 %v622_v39, %v592_v42  ;;  %v597_v28 = vmul.f32 %v1084_v54, %v1084_v54 }
 0x11f   :  { %v624_v48 = vadd.f32 %v623_v46, %v593_v43  ;;  %v555_v49 = vadd.f32 %v554_v44, %v1061_v37  ;;  %v598_v37 = vmul.f32 %v1090_v1, %v1090_v1 }
 0x121   :  { %v556_v50 = vadd.f32 %v555_v49, %v1094_v8  ;;  %v625_v52 = vadd.f32 %v624_v48, %v594_v47  ;;  %v599_v8 = vmul.f32 %v1126_v45, %v1126_v45 }
 0x123   :  { %v626_v53 = vadd.f32 %v625_v52, %v595_v32  ;;  %v557_v40 = vadd.f32 %v556_v50, %v1105_v14 }
 0x125   :  { %v558_v56 = vadd.f32 %v557_v40, %v1084_v54  ;;  %v627_v57 = vadd.f32 %v626_v53, %v596_v55  ;;  %v601_v54 = vmul.f32 %v1113_v22, %v1113_v22 }
 0x127   :  { %v628_v58 = vadd.f32 %v627_v57, %v597_v28  ;;  %v559_v59 = vadd.f32 %v558_v56, %v1090_v1  ;;  %v602_v1 = vmul.f32 %v1122_v36, %v1122_v36 }
 0x129   :  { %v560_v61 = vadd.f32 %v559_v59, %v1126_v45  ;;  %v629_v62 = vadd.f32 %v628_v58, %v598_v37  ;;  %v603_v45 = vmul.f32 %v363_v17, %v363_v17 }
 0x12b   :  { %v630_v63 = vadd.f32 %v629_v62, %v599_v8  ;;  %v561_v14 = vadd.f32 %v560_v61, %v1137_v51  ;;  %v605_v51 = vmul.f32 %v1145_v60, %v1145_v60 }
 0x12d   :  { %v562_v2 = vadd.f32 %v561_v14, %v1113_v22  ;;  %v631_v3 = vadd.f32 %v630_v63, %v600_v0  ;;  %v606_v22 = vmul.f32 %v1154_v9, %v1154_v9 }
 0x12f   :  { %v632_v4 = vadd.f32 %v631_v3, %v601_v54  ;;  %v563_v5 = vadd.f32 %v562_v2, %v1122_v36 }
 0x131   :  { %v564_v6 = vadd.f32 %v563_v5, %v363_v17  ;;  %v633_v7 = vadd.f32 %v632_v4, %v602_v1 }
 0x133   :  { %v634_v10 = vadd.f32 %v633_v7, %v603_v45  ;;  %v565_v11 = vadd.f32 %v564_v6, %v366_v25 }
 0x135   :  { %v566_v13 = vadd.f32 %v565_v11, %v1145_v60  ;;  %v635_v15 = vadd.f32 %v634_v10, %v604_v12 }
 0x137   :  { %v567_v16 = vadd.f32 %v566_v13, %v1154_v9  ;;  %v636_v18 = vadd.f32 %v635_v15, %v605_v51 }
 0x139   :  { %v568_v19 = vrot.slane %v567_v16, 4  ;;  %v637_v36 = vadd.f32 %v636_v18, %v606_v22 }
 0x13b   :  { %v569_v20 = vadd.f32 %v568_v19, %v567_v16  ;;  %v638_v17 = vrot.slane %v637_v36, 4 }
 0x13d   :  { %v570_v21 = vrot.slane %v569_v20, 2  ;;  %v639_v23 = vadd.f32 %v638_v17, %v637_v36 }
 0x13f   :  { %v571_v26 = vadd.f32 %v570_v21, %v569_v20  ;;  %v640_v25 = vrot.slane %v639_v23, 2 }
 0x141   :  { %v572_v27 = vrot.slane %v571_v26, 1  ;;  %v641_v29 = vadd.f32 %v640_v25, %v639_v23 }
 0x143   :  { %v573_v30 = vadd.f32 %v572_v27, %v571_v26  ;;  %v642_v31 = vrot.slane %v641_v29, 1 }
 0x145   :  { %574 = vst [vmem:[%s1225_s4] sm:$0x1] %v573_v30  ;;  %v643_v60 = vadd.f32 %v642_v31, %v641_v29 }
 0x147   :  { %644 = vst [vmem:[%s1225_s4 + $0x1] sm:$0x1] %v643_v60 }

// kernel: squeeze.149
= control target key start
LH: loop header
LB: loop body
LE: loop exit
PB: predicated region body
PF: predicated region fallthrough
CT: control target
= control target key end

     0   :  { %s37_s8 = smov 32   ;;  %vm7_vm0 = vcmask 261120   ;;  %s38_s9 = smov 64   ;;  %s55_s0 = inlined_call_operand.vmem [shape: f32[128], index: 0, kind: input, shape index: {}]   ;;  %s56_s1 = inlined_call_operand.vmem [shape: f32[4,32], index: 1, kind: output, shape index: {}]  }
   0x1   :  { %v4_v0 = vld [vmem:[%s55_s0] sm:$0x1]  ;;  %s36_s0 = smov 96  }
   0x2   :  { %5 = vst [vmem:[#allocation1] sm:$0x1] %v4_v0 }
   0x9   :  { %v9_v1 = vld [vmem:[#allocation1] sm:$0x1]  }
   0xa   :  { %v21_v2 = vld [vmem:[#allocation1] sm:$0x1]   ;;  %10 = vrot.lane.b32.xlu0 %v9_v1, %s36_s0 }
   0xb   :  { %22 = vrot.lane.b32.xlu1 %v21_v2, %s37_s8  ;;  %v6_v3 = vld [vmem:[#allocation1] sm:$0x1]  }
   0xc   :  { %v15_v4 = vld [vmem:[#allocation1] sm:$0x1]   ;;  %8 = vst.msk [vmem:[#allocation0] sm:$0x1] %vm7_vm0, %v6_v3  }
   0xe   :  { %16 = vrot.lane.b32.xlu0 %v15_v4, %s38_s9 }
  0x7c   :  { %v11_v5 = vpop.permute.xlu0 %10  }
  0x7d   :  { %v23_v6 = vpop.permute.xlu1 %22   ;;  %14 = vst.msk [vmem:[#allocation0 + $0x1] sm:$0x1] %vm7_vm0, %v11_v5  }
  0x7e   :  { %26 = vst.msk [vmem:[#allocation0 + $0x3] sm:$0x1] %vm7_vm0, %v23_v6  }
  0x80   :  { %v17_v7 = vpop.permute.xlu0 %16  }
  0x81   :  { %20 = vst.msk [vmem:[#allocation0 + $0x2] sm:$0x1] %vm7_vm0, %v17_v7  }
  0x88   :  { %v30_v8 = vld [vmem:[#allocation0] sm:$0xf] }
  0x89   :  { %32 = vst [vmem:[%s56_s1] sm:$0xf] %v30_v8 }

// kernel: decoder_forward.3
= control target key start
LH: loop header
LB: loop body
LE: loop exit
PB: predicated region body
PF: predicated region fallthrough
CT: control target
= control target key end

     0   :  { %s847_s0 = inlined_call_operand.vmem [shape: bf16[256,128], index: 0, kind: input, shape index: {}, may-alias: {0,3}]   ;;  %s848_s1 = inlined_call_operand.vmem [shape: f32[1,128], index: 1, kind: input, shape index: {}]   ;;  %s849_s2 = inlined_call_operand.vmem [shape: f32[1,128], index: 2, kind: input, shape index: {}]   ;;  %s850_s3 = inlined_call_operand.vmem [shape: bf16[256,128], index: 3, kind: output, shape index: {}, may-alias: {0,3}]  }
   0x1   :  { %v483_v0 = vld [vmem:[%s847_s0] sm:$0xff]   ;;  %v626_v4 = vld [vmem:[%s847_s0 + $0x8] sm:$0xff]   ;;  %v627_v5 = vld [vmem:[%s847_s0 + $0x10] sm:$0xff]  }
   0x2   :  { %v682_v1 = vld [vmem:[%s848_s1] ss:$0 sm:$0xff]  ;;  %v484_v2 = vunpack.c.l.bf16 %v483_v0  ;;  %v485_v3 = vunpack.c.h.bf16 %v483_v0  ;;  %v628_v6 = vld [vmem:[%s847_s0 + $0x18] sm:$0xff]   ;;  %v488_v8 = vunpack.c.l.bf16 %v626_v4  ;;  %v489_v9 = vunpack.c.h.bf16 %v626_v4  ;;  %v630_v35 = vld [vmem:[%s847_s0 + $0x28] sm:$0xff]  }
   0x3   :  { %v696_v7 = vld [vmem:[%s849_s2] ss:$0 sm:$0xff]  ;;  %v492_v10 = vunpack.c.l.bf16 %v627_v5  ;;  %v493_v11 = vunpack.c.h.bf16 %v627_v5  ;;  %v496_v14 = vunpack.c.l.bf16 %v628_v6  ;;  %v497_v15 = vunpack.c.h.bf16 %v628_v6 }
   0x4   :  { %v85_v12 = vmul.f32 %v484_v2, %v682_v1  ;;  %v86_v13 = vmul.f32 %v485_v3, %v682_v1  ;;  %v87_v16 = vmul.f32 %v488_v8, %v682_v1  ;;  %v88_v17 = vmul.f32 %v489_v9, %v682_v1  ;;  %v629_v34 = vld [vmem:[%s847_s0 + $0x20] sm:$0xff]  }
   0x5   :  { %v89_v18 = vmul.f32 %v492_v10, %v682_v1  ;;  %v90_v19 = vmul.f32 %v493_v11, %v682_v1  ;;  %v91_v22 = vmul.f32 %v496_v14, %v682_v1  ;;  %v92_v23 = vmul.f32 %v497_v15, %v682_v1 }
   0x6   :  { %v124_v20 = vadd.f32 %v696_v7, %v85_v12  ;;  %v125_v21 = vadd.f32 %v696_v7, %v86_v13  ;;  %v126_v24 = vadd.f32 %v696_v7, %v87_v16  ;;  %v127_v25 = vadd.f32 %v696_v7, %v88_v17 }
   0x7   :  { %v128_v26 = vadd.f32 %v696_v7, %v89_v18  ;;  %v129_v27 = vadd.f32 %v696_v7, %v90_v19  ;;  %v130_v42 = vadd.f32 %v696_v7, %v91_v22  ;;  %v131_v43 = vadd.f32 %v696_v7, %v92_v23 }
   0x8   :  { %vm156_vm0 = vcmp.ge.f32.partialorder %v124_v20, 0.0  ;;  %vm157_vm1 = vcmp.ge.f32.partialorder %v125_v21, 0.0  ;;  %v188_v28 = vmul.f32 0.01, %v124_v20  ;;  %v189_v29 = vmul.f32 0.01, %v125_v21 }
   0x9   :  { %vm158_vm2 = vcmp.ge.f32.partialorder %v126_v24, 0.0  ;;  %vm159_vm3 = vcmp.ge.f32.partialorder %v127_v25, 0.0  ;;  %v190_v30 = vmul.f32 0.01, %v126_v24  ;;  %v191_v31 = vmul.f32 0.01, %v127_v25 }
   0xa   :  { %v220_v32 = vsel %vm156_vm0, %v124_v20, %v188_v28  ;;  %v221_v33 = vsel %vm157_vm1, %v125_v21, %v189_v29  ;;  %vm160_vm4 = vcmp.ge.f32.partialorder %v128_v26, 0.0  ;;  %vm161_vm5 = vcmp.ge.f32.partialorder %v129_v27, 0.0 }
   0xb   :  { %v549_v36 = vpack.c.bf16 %v221_v33, %v220_v32  ;;  %v222_v37 = vsel %vm158_vm2, %v126_v24, %v190_v30  ;;  %v223_v38 = vsel %vm159_vm3, %v127_v25, %v191_v31  ;;  %v192_v39 = vmul.f32 0.01, %v128_v26 }
   0xc   :  { %v554_v40 = vpack.c.bf16 %v223_v38, %v222_v37  ;;  %v193_v41 = vmul.f32 0.01, %v129_v27  ;;  %v500_v45 = vunpack.c.l.bf16 %v629_v34  ;;  %v501_v46 = vunpack.c.h.bf16 %v629_v34 }
   0xd   :  { %550 = vst [vmem:[%s850_s3] sm:$0xff] %v549_v36   ;;  %v224_v44 = vsel %vm160_vm4, %v128_v26, %v192_v39  ;;  %v504_v47 = vunpack.c.l.bf16 %v630_v35  ;;  %vm162_vm6 = vcmp.ge.f32.partialorder %v130_v42, 0.0  ;;  %vm163_vm7 = vcmp.ge.f32.partialorder %v131_v43, 0.0 }
   0xe   :  { %v225_v49 = vsel %vm161_vm5, %v129_v27, %v193_v41  ;;  %v194_v50 = vmul.f32 0.01, %v130_v42  ;;  %v195_v52 = vmul.f32 0.01, %v131_v43  ;;  %v93_v53 = vmul.f32 %v500_v45, %v682_v1 }
   0xf   :  { %v559_v51 = vpack.c.bf16 %v225_v49, %v224_v44  ;;  %v94_v54 = vmul.f32 %v501_v46, %v682_v1  ;;  %v505_v56 = vunpack.c.h.bf16 %v630_v35  ;;  %v95_v57 = vmul.f32 %v504_v47, %v682_v1 }
  0x10   :  { %v226_v55 = vsel %vm162_vm6, %v130_v42, %v194_v50  ;;  %v227_v59 = vsel %vm163_vm7, %v131_v43, %v195_v52  ;;  %v132_v60 = vadd.f32 %v696_v7, %v93_v53 }
  0x11   :  { %v133_v61 = vadd.f32 %v696_v7, %v94_v54  ;;  %v564_v63 = vpack.c.bf16 %v227_v59, %v226_v55  ;;  %v96_v0 = vmul.f32 %v505_v56, %v682_v1  ;;  %v134_v2 = vadd.f32 %v696_v7, %v95_v57 }
  0x12   :  { %vm164_vm8 = vcmp.ge.f32.partialorder %v132_v60, 0.0  ;;  %v196_v5 = vmul.f32 0.01, %v132_v60 }
  0x13   :  { %vm165_vm9 = vcmp.ge.f32.partialorder %v133_v61, 0.0  ;;  %v197_v6 = vmul.f32 0.01, %v133_v61  ;;  %v135_v8 = vadd.f32 %v696_v7, %v96_v0  ;;  %vm166_vm10 = vcmp.ge.f32.partialorder %v134_v2, 0.0 }
  0x14   :  { %v631_v48 = vld [vmem:[%s847_s0 + $0x30] sm:$0xff]   ;;  %v198_v9 = vmul.f32 0.01, %v134_v2  ;;  %v228_v11 = vsel %vm164_vm8, %v132_v60, %v196_v5 }
  0x15   :  { %641 = vst [vmem:[%s850_s3 + $0x8] sm:$0xff] %v554_v40   ;;  %v508_v58 = vunpack.c.l.bf16 %v631_v48  ;;  %642 = vst [vmem:[%s850_s3 + $0x10] sm:$0xff] %v559_v51   ;;  %v509_v62 = vunpack.c.h.bf16 %v631_v48  ;;  %v229_v12 = vsel %vm165_vm9, %v133_v61, %v197_v6  ;;  %vm167_vm11 = vcmp.ge.f32.partialorder %v135_v8, 0.0 }
  0x16   :  { %v569_v16 = vpack.c.bf16 %v229_v12, %v228_v11  ;;  %v199_v17 = vmul.f32 0.01, %v135_v8  ;;  %v230_v18 = vsel %vm166_vm10, %v134_v2, %v198_v9 }
  0x17   :  { %v97_v3 = vmul.f32 %v508_v58, %v682_v1  ;;  %v98_v10 = vmul.f32 %v509_v62, %v682_v1 }
  0x18   :  { %v231_v22 = vsel %vm167_vm11, %v135_v8, %v199_v17 }
  0x19   :  { %v136_v13 = vadd.f32 %v696_v7, %v97_v3  ;;  %v137_v19 = vadd.f32 %v696_v7, %v98_v10  ;;  %v574_v28 = vpack.c.bf16 %v231_v22, %v230_v18 }
  0x1b   :  { %vm168_vm12 = vcmp.ge.f32.partialorder %v136_v13, 0.0  ;;  %v200_v20 = vmul.f32 0.01, %v136_v13  ;;  %vm169_vm13 = vcmp.ge.f32.partialorder %v137_v19, 0.0  ;;  %v201_v29 = vmul.f32 0.01, %v137_v19 }
  0x1c   :  { %v632_v4 = vld [vmem:[%s847_s0 + $0x38] sm:$0xff]  }
  0x1d   :  { %643 = vst [vmem:[%s850_s3 + $0x18] sm:$0xff] %v564_v63   ;;  %v512_v14 = vunpack.c.l.bf16 %v632_v4  ;;  %v513_v21 = vunpack.c.h.bf16 %v632_v4  ;;  %v232_v30 = vsel %vm168_vm12, %v136_v13, %v200_v20  ;;  %v233_v35 = vsel %vm169_vm13, %v137_v19, %v201_v29 }
  0x1e   :  { %v579_v39 = vpack.c.bf16 %v233_v35, %v232_v30 }
  0x1f   :  { %v99_v23 = vmul.f32 %v512_v14, %v682_v1  ;;  %v100_v31 = vmul.f32 %v513_v21, %v682_v1 }
  0x21   :  { %v138_v32 = vadd.f32 %v696_v7, %v99_v23  ;;  %v139_v40 = vadd.f32 %v696_v7, %v100_v31 }
  0x23   :  { %vm170_vm14 = vcmp.ge.f32.partialorder %v138_v32, 0.0  ;;  %v202_v41 = vmul.f32 0.01, %v138_v32  ;;  %vm171_vm15 = vcmp.ge.f32.partialorder %v139_v40, 0.0  ;;  %v203_v46 = vmul.f32 0.01, %v139_v40 }
  0x24   :  { %v633_v15 = vld [vmem:[%s847_s0 + $0x40] sm:$0xff]  }
  0x25   :  { %644 = vst [vmem:[%s850_s3 + $0x20] sm:$0xff] %v569_v16   ;;  %v516_v24 = vunpack.c.l.bf16 %v633_v15  ;;  %v517_v25 = vunpack.c.h.bf16 %v633_v15  ;;  %v234_v47 = vsel %vm170_vm14, %v138_v32, %v202_v41  ;;  %v235_v51 = vsel %vm171_vm15, %v139_v40, %v203_v46 }
  0x26   :  { %v584_v56 = vpack.c.bf16 %v235_v51, %v234_v47 }
  0x27   :  { %v101_v33 = vmul.f32 %v516_v24, %v682_v1  ;;  %v102_v34 = vmul.f32 %v517_v25, %v682_v1 }
  0x29   :  { %v140_v42 = vadd.f32 %v696_v7, %v101_v33  ;;  %v141_v43 = vadd.f32 %v696_v7, %v102_v34 }
  0x2b   :  { %vm172_vm0 = vcmp.ge.f32.partialorder %v140_v42, 0.0  ;;  %vm173_vm1 = vcmp.ge.f32.partialorder %v141_v43, 0.0  ;;  %v204_v49 = vmul.f32 0.01, %v140_v42  ;;  %v205_v50 = vmul.f32 0.01, %v141_v43 }
  0x2c   :  { %v634_v26 = vld [vmem:[%s847_s0 + $0x48] sm:$0xff]   ;;  %v635_v27 = vld [vmem:[%s847_s0 + $0x50] sm:$0xff]  }
  0x2d   :  { %645 = vst [vmem:[%s850_s3 + $0x28] sm:$0xff] %v574_v28   ;;  %v520_v36 = vunpack.c.l.bf16 %v634_v26  ;;  %v521_v37 = vunpack.c.h.bf16 %v634_v26  ;;  %v524_v38 = vunpack.c.l.bf16 %v635_v27  ;;  %646 = vst [vmem:[%s850_s3 + $0x30] sm:$0xff] %v579_v39   ;;  %v525_v48 = vunpack.c.h.bf16 %v635_v27 }
  0x2e   :  { %v236_v57 = vsel %vm172_vm0, %v140_v42, %v204_v49  ;;  %v237_v58 = vsel %vm173_vm1, %v141_v43, %v205_v50 }
  0x2f   :  { %v103_v44 = vmul.f32 %v520_v36, %v682_v1  ;;  %v104_v45 = vmul.f32 %v521_v37, %v682_v1  ;;  %v105_v54 = vmul.f32 %v524_v38, %v682_v1  ;;  %v106_v59 = vmul.f32 %v525_v48, %v682_v1 }
  0x30   :  { %v589_v61 = vpack.c.bf16 %v237_v58, %v236_v57 }
  0x31   :  { %v142_v52 = vadd.f32 %v696_v7, %v103_v44  ;;  %v143_v53 = vadd.f32 %v696_v7, %v104_v45  ;;  %v144_v0 = vadd.f32 %v696_v7, %v105_v54  ;;  %v145_v2 = vadd.f32 %v696_v7, %v106_v59 }
  0x33   :  { %vm174_vm2 = vcmp.ge.f32.partialorder %v142_v52, 0.0  ;;  %vm175_vm3 = vcmp.ge.f32.partialorder %v143_v53, 0.0  ;;  %v206_v62 = vmul.f32 0.01, %v142_v52  ;;  %v207_v63 = vmul.f32 0.01, %v143_v53 }
  0x34   :  { %v636_v55 = vld [vmem:[%s847_s0 + $0x58] sm:$0xff]   ;;  %v637_v60 = vld [vmem:[%s847_s0 + $0x60] sm:$0xff]   ;;  %vm176_vm4 = vcmp.ge.f32.partialorder %v144_v0, 0.0  ;;  %vm177_vm5 = vcmp.ge.f32.partialorder %v145_v2, 0.0  ;;  %v208_v11 = vmul.f32 0.01, %v144_v0 }
  0x35   :  { %647 = vst [vmem:[%s850_s3 + $0x38] sm:$0xff] %v584_v56   ;;  %v528_v3 = vunpack.c.l.bf16 %v636_v55  ;;  %648 = vst [vmem:[%s850_s3 + $0x40] sm:$0xff] %v589_v61   ;;  %v238_v4 = vsel %vm174_vm2, %v142_v52, %v206_v62  ;;  %v529_v5 = vunpack.c.h.bf16 %v636_v55  ;;  %v532_v6 = vunpack.c.l.bf16 %v637_v60 }
  0x36   :  { %v533_v8 = vunpack.c.h.bf16 %v637_v60  ;;  %v239_v10 = vsel %vm175_vm3, %v143_v53, %v207_v63  ;;  %v209_v13 = vmul.f32 0.01, %v145_v2  ;;  %v240_v16 = vsel %vm176_vm4, %v144_v0, %v208_v11 }
  0x37   :  { %v594_v12 = vpack.c.bf16 %v239_v10, %v238_v4  ;;  %v107_v14 = vmul.f32 %v528_v3, %v682_v1  ;;  %v108_v15 = vmul.f32 %v529_v5, %v682_v1  ;;  %v109_v17 = vmul.f32 %v532_v6, %v682_v1 }
  0x38   :  { %v110_v18 = vmul.f32 %v533_v8, %v682_v1  ;;  %v241_v20 = vsel %vm177_vm5, %v145_v2, %v209_v13 }
  0x39   :  { %v146_v21 = vadd.f32 %v696_v7, %v107_v14  ;;  %v147_v22 = vadd.f32 %v696_v7, %v108_v15  ;;  %v599_v24 = vpack.c.bf16 %v241_v20, %v240_v16  ;;  %v148_v25 = vadd.f32 %v696_v7, %v109_v17 }
  0x3a   :  { %v149_v26 = vadd.f32 %v696_v7, %v110_v18 }
  0x3b   :  { %vm178_vm6 = vcmp.ge.f32.partialorder %v146_v21, 0.0  ;;  %vm179_vm7 = vcmp.ge.f32.partialorder %v147_v22, 0.0  ;;  %v210_v29 = vmul.f32 0.01, %v146_v21  ;;  %v211_v30 = vmul.f32 0.01, %v147_v22 }
  0x3c   :  { %v638_v9 = vld [vmem:[%s847_s0 + $0x68] sm:$0xff]   ;;  %vm180_vm8 = vcmp.ge.f32.partialorder %v148_v25, 0.0  ;;  %vm181_vm9 = vcmp.ge.f32.partialorder %v149_v26, 0.0  ;;  %v212_v31 = vmul.f32 0.01, %v148_v25 }
  0x3d   :  { %v536_v19 = vunpack.c.l.bf16 %v638_v9  ;;  %649 = vst [vmem:[%s850_s3 + $0x48] sm:$0xff] %v594_v12   ;;  %v537_v23 = vunpack.c.h.bf16 %v638_v9  ;;  %v213_v32 = vmul.f32 0.01, %v149_v26  ;;  %v242_v33 = vsel %vm178_vm6, %v146_v21, %v210_v29 }
  0x3e   :  { %v243_v34 = vsel %vm179_vm7, %v147_v22, %v211_v30  ;;  %v244_v39 = vsel %vm180_vm8, %v148_v25, %v212_v31 }
  0x3f   :  { %v111_v27 = vmul.f32 %v536_v19, %v682_v1  ;;  %v112_v35 = vmul.f32 %v537_v23, %v682_v1  ;;  %v604_v38 = vpack.c.bf16 %v243_v34, %v242_v33  ;;  %v245_v40 = vsel %vm181_vm9, %v149_v26, %v213_v32 }
  0x40   :  { %v609_v42 = vpack.c.bf16 %v245_v40, %v244_v39 }
  0x41   :  { %v150_v36 = vadd.f32 %v696_v7, %v111_v27  ;;  %v151_v43 = vadd.f32 %v696_v7, %v112_v35 }
  0x43   :  { %vm182_vm10 = vcmp.ge.f32.partialorder %v150_v36, 0.0  ;;  %v214_v44 = vmul.f32 0.01, %v150_v36  ;;  %vm183_vm11 = vcmp.ge.f32.partialorder %v151_v43, 0.0  ;;  %v215_v49 = vmul.f32 0.01, %v151_v43 }
  0x44   :  { %v639_v28 = vld [vmem:[%s847_s0 + $0x70] sm:$0xff]  }
  0x45   :  { %650 = vst [vmem:[%s850_s3 + $0x50] sm:$0xff] %v599_v24   ;;  %v540_v41 = vunpack.c.l.bf16 %v639_v28  ;;  %v541_v45 = vunpack.c.h.bf16 %v639_v28  ;;  %v246_v50 = vsel %vm182_vm10, %v150_v36, %v214_v44  ;;  %v247_v55 = vsel %vm183_vm11, %v151_v43, %v215_v49 }
  0x46   :  { %v614_v56 = vpack.c.bf16 %v247_v55, %v246_v50 }
  0x47   :  { %v113_v46 = vmul.f32 %v540_v41, %v682_v1  ;;  %v114_v51 = vmul.f32 %v541_v45, %v682_v1 }
  0x49   :  { %v152_v52 = vadd.f32 %v696_v7, %v113_v46  ;;  %v153_v57 = vadd.f32 %v696_v7, %v114_v51 }
  0x4b   :  { %vm184_vm12 = vcmp.ge.f32.partialorder %v152_v52, 0.0  ;;  %v216_v58 = vmul.f32 0.01, %v152_v52  ;;  %vm185_vm13 = vcmp.ge.f32.partialorder %v153_v57, 0.0  ;;  %v217_v61 = vmul.f32 0.01, %v153_v57 }
  0x4c   :  { %v640_v37 = vld [vmem:[%s847_s0 + $0x78] sm:$0xff]  }
  0x4d   :  { %651 = vst [vmem:[%s850_s3 + $0x58] sm:$0xff] %v604_v38   ;;  %v544_v47 = vunpack.c.l.bf16 %v640_v37  ;;  %v545_v48 = vunpack.c.h.bf16 %v640_v37  ;;  %652 = vst [vmem:[%s850_s3 + $0x60] sm:$0xff] %v609_v42   ;;  %v248_v62 = vsel %vm184_vm12, %v152_v52, %v216_v58  ;;  %v249_v0 = vsel %vm185_vm13, %v153_v57, %v217_v61 }
  0x4e   :  { %653 = vst [vmem:[%s850_s3 + $0x68] sm:$0xff] %v614_v56   ;;  %v619_v2 = vpack.c.bf16 %v249_v0, %v248_v62 }
  0x4f   :  { %v115_v53 = vmul.f32 %v544_v47, %v682_v1  ;;  %v116_v54 = vmul.f32 %v545_v48, %v682_v1 }
  0x50   :  { %654 = vst [vmem:[%s850_s3 + $0x70] sm:$0xff] %v619_v2  }
  0x51   :  { %v154_v59 = vadd.f32 %v696_v7, %v115_v53  ;;  %v155_v60 = vadd.f32 %v696_v7, %v116_v54 }
  0x53   :  { %vm186_vm14 = vcmp.ge.f32.partialorder %v154_v59, 0.0  ;;  %vm187_vm15 = vcmp.ge.f32.partialorder %v155_v60, 0.0  ;;  %v218_v1 = vmul.f32 0.01, %v154_v59  ;;  %v219_v63 = vmul.f32 0.01, %v155_v60 }
  0x55   :  { %v250_v3 = vsel %vm186_vm14, %v154_v59, %v218_v1  ;;  %v251_v4 = vsel %vm187_vm15, %v155_v60, %v219_v63 }
  0x56   :  { %v624_v5 = vpack.c.bf16 %v251_v4, %v250_v3 }
  0x58   :  { %655 = vst [vmem:[%s850_s3 + $0x78] sm:$0xff] %v624_v5  }

</bundles_post_ra>
